<compile_context>
chip_gen: v6e
topology: v6e:2x2x1
jax: 0.10.0
libtpu: 0.0.40
codegen_flags: <defaults>
</compile_context>

<pallas_src>
import jax
import jax.numpy as jnp
from jax.experimental import pallas as pl
from jax.experimental.pallas import tpu as pltpu

_LANES = 1024  # lane-dense slab width (large multiple of 128)


def _trelu_kernel(alpha_ref, x_ref, o_ref):
    # alpha is a 32-bit scalar held in SMEM; cast it to the compute dtype so
    # the whole VPU chain stays in the input dtype (no f32 promotion for bf16)
    # and the store into o_ref is exact-dtype.
    xv = x_ref[...]
    a = alpha_ref[0].astype(xv.dtype)
    y = jnp.maximum(xv - a, jnp.zeros((), xv.dtype)) + a
    o_ref[...] = y.astype(o_ref.dtype)


def trelu(x: jax.Array, alpha: jax.Array, *, lanes: int = _LANES) -> jax.Array:
    """y = relu(x - alpha) + alpha, elementwise, via a Pallas TPU kernel."""
    orig_shape = x.shape
    dtype = x.dtype
    n = int(x.size)
    itemsize = jnp.dtype(dtype).itemsize

    # ---- lane-dense slab: flatten, then view as (rows, lanes) ---------------
    rows_unpadded = -(-n // lanes)  # cdiv(n, lanes)

    # ---- generation-aware block sizing (HBM roofline, VMEM-safe) ------------
    try:
        vmem_cap = int(getattr(pltpu.get_tpu_info(), "vmem_capacity_bytes",
                               64 << 20))
    except Exception:  # conservative fallback (v7x-sized VMEM)
        vmem_cap = 64 << 20
    # Target a few MiB per block; 4 live buffers (in + out, double-buffered)
    # must fit comfortably inside the scoped VMEM limit.
    target_block_bytes = min(8 << 20, max(1 << 20, vmem_cap // 16))
    row_tile = max(8, (target_block_bytes // (lanes * itemsize)) // 8 * 8)
    # Never tile past the data itself (rounded up to a sublane multiple).
    rows_rounded = ((rows_unpadded + 7) // 8) * 8
    row_tile = min(row_tile, rows_rounded)
    # Keep >= 2 grid steps when there is enough data so the "parallel" axis
    # can be sharded across both TensorCores on v7x.
    if rows_unpadded >= 16:
        half_rows = (rows_unpadded + 1) // 2
        half_rows = ((half_rows + 7) // 8) * 8
        row_tile = min(row_tile, max(8, half_rows))
    row_tile = int(row_tile)

    num_blocks = -(-rows_unpadded // row_tile)  # cdiv
    rows = num_blocks * row_tile
    padded_n = rows * lanes

    flat = x.reshape(-1)
    if padded_n != n:
        flat = jnp.pad(flat, (0, padded_n - n))
    x2 = flat.reshape(rows, lanes)

    block_bytes = row_tile * lanes * itemsize
    # Explicitly raise the scoped-VMEM limit (default 16 MiB on v5e / 32 MiB on
    # v6e-v7x) to cover double-buffered in+out blocks, with headroom.
    vmem_limit = int(min(vmem_cap * 3 // 4,
                         max(32 << 20, 4 * block_bytes + (4 << 20))))

    alpha_s = alpha.reshape(1).astype(jnp.float32)  # 32-bit scalar for SMEM

    out2 = pl.pallas_call(
        _trelu_kernel,
        out_shape=jax.ShapeDtypeStruct((rows, lanes), dtype),
        grid_spec=pltpu.PrefetchScalarGridSpec(
            num_scalar_prefetch=0,
            grid=(num_blocks,),
            in_specs=[
                # scalar parameter alpha lives in SMEM, same block every step
                pl.BlockSpec(memory_space=pltpu.SMEM),
                pl.BlockSpec((row_tile, lanes), lambda i: (i, 0)),
            ],
            out_specs=pl.BlockSpec((row_tile, lanes), lambda i: (i, 0)),
        ),
        compiler_params=pltpu.CompilerParams(
            dimension_semantics=("parallel",),
            vmem_limit_bytes=vmem_limit,
        ),
    )(alpha_s, x2)

    out_flat = out2.reshape(-1)
    if padded_n != n:
        out_flat = out_flat[:n]
    return out_flat.reshape(orig_shape)


if __name__ == "__main__":
    key = jax.random.PRNGKey(0)
    # NCHW input, consistent with how TReLU is used after conv layers.
    x = jax.random.normal(key, (2, 4, 16, 16), dtype=jnp.float32)

    # Parameter init matches the module: alpha.data.fill_(0)
    alpha = jnp.zeros((1,), dtype=jnp.float32)

    y = trelu(x, alpha)
    jax.block_until_ready(y)

    # Sanity check against the pure-JAX reference of the PyTorch forward.
    ref = jnp.maximum(x - alpha[0], 0.0) + alpha[0]
    assert y.shape == x.shape and y.dtype == x.dtype
    assert jnp.allclose(y, ref, atol=1e-6), "mismatch vs reference"

    # Also exercise a nonzero alpha so the learnable-threshold path is checked.
    alpha2 = jnp.array([0.25], dtype=jnp.float32)
    y2 = trelu(x, alpha2)
    jax.block_until_ready(y2)
    ref2 = jnp.maximum(x - 0.25, 0.0) + 0.25
    assert jnp.allclose(y2, ref2, atol=1e-6), "mismatch vs reference (alpha=0.25)"

    print("KERNEL_OK")
</pallas_src>

<mosaic_0001>
module attributes {stable_mosaic.version = 11 : i64} {
  func.func @_trelu_kernel(%arg0: i32, %arg1: memref<1xf32, #tpu.memory_space<smem>>, %arg2: memref<8x1024xf32, #tpu.memory_space<vmem>>, %arg3: memref<8x1024xf32, #tpu.memory_space<vmem>>) attributes {dimension_semantics = [#tpu.dimension_semantics<parallel>], iteration_bounds = array<i64: 1>, scalar_prefetch = 0 : i64, scratch_operands = 0 : i64, tpu.core_type = #tpu.core_type<tc>, window_params = [{transform_indices = @transform_0, window_bounds = array<i64: 1>}, {transform_indices = @transform_1, window_bounds = array<i64: 8, 1024>}, {transform_indices = @transform_2, window_bounds = array<i64: 8, 1024>}]} {
    %c0 = arith.constant 0 : index
    %c0_0 = arith.constant 0 : index
    %0 = vector.load %arg2[%c0, %c0_0] : memref<8x1024xf32, #tpu.memory_space<vmem>>, vector<8x1024xf32>
    %c0_1 = arith.constant 0 : index
    %1 = memref.load %arg1[%c0_1] : memref<1xf32, #tpu.memory_space<smem>>
    %2 = vector.broadcast %1 : f32 to vector<8x1024xf32>
    %3 = arith.subf %0, %2 : vector<8x1024xf32>
    %cst = arith.constant 0.000000e+00 : f32
    %4 = vector.broadcast %cst : f32 to vector<8x1024xf32>
    %5 = arith.maximumf %3, %4 : vector<8x1024xf32>
    %6 = vector.broadcast %1 : f32 to vector<8x1024xf32>
    %7 = arith.addf %5, %6 : vector<8x1024xf32>
    %c0_2 = arith.constant 0 : index
    %c0_3 = arith.constant 0 : index
    %8 = vector.load %arg3[%c0_2, %c0_3] : memref<8x1024xf32, #tpu.memory_space<vmem>>, vector<8x1024xf32>
    tpu.vector_store %arg3[%c0_2, %c0_3], %7 {strides = array<i32>} : memref<8x1024xf32, #tpu.memory_space<vmem>>, vector<8x1024xf32>,
    return
  }
  func.func @transform_0(%arg0: i32) -> i32 {
    %c0_i32 = arith.constant 0 : i32
    %c0_i32_0 = arith.constant 0 : i32
    return %c0_i32 : i32
  }
  func.func @transform_1(%arg0: i32) -> (i32, i32) {
    %c0_i32 = arith.constant 0 : i32
    %c0_i32_0 = arith.constant 0 : i32
    return %arg0, %c0_i32 : i32, i32
  }
  func.func @transform_2(%arg0: i32) -> (i32, i32) {
    %c0_i32 = arith.constant 0 : i32
    %c0_i32_0 = arith.constant 0 : i32
    return %arg0, %c0_i32 : i32, i32
  }
}

</mosaic_0001>

<bundles_post_ra>
// kernel: tpu_custom_call.1
= control target key start
LH: loop header
LB: loop body
LE: loop exit
PB: predicated region body
PF: predicated region fallthrough
CT: control target
= control target key end

     0   :  { %8 = vsyncpa [#allocation4], 0  ;;  %s154_s0 = inlined_call_operand.<no memory space> [shape: f32[1], index: 0, kind: input, shape index: {}]   ;;  %s155_s1 = inlined_call_operand.hbm [shape: f32[8,1024], index: 1, kind: input, shape index: {}]   ;;  %s156_s2 = inlined_call_operand.hbm [shape: f32[8,1024], index: 2, kind: output, shape index: {}]  }
   0x1   :  { %9 = vsyncpa [#allocation5], 0  ;;  %s128_s9 = smov [#allocation3]  }
   0x2   :  { %s18_s10 = sshll.u32 %s128_s9, 4  ;;  %s19_s10 = int_to_ptr.vmem [resolvable:$true] %s18_s10 }
   0x3   :  { %s92_s11 = scalar_lea.vmem %s19_s10, 1024  ;;  %p97_p1 = scmp.lt.s32.totalorder %s19_s10, %s19_s10 }
   0x4   :  { %p93_p0 = scmp.ne.s32.totalorder %s19_s10, %s92_s11  ;;  %p98_p2 = scmp.lt.s32.totalorder %s92_s11, %s92_s11 }
   0x6   :  { %p99_p3 = por %p98_p2, %p97_p1 }
   0x8   :  { %p100_p4 = pnand %p99_p3, %p93_p0 }
   0xa   :  { %103 = shalt.err (!%p100_p4)
}
   0xb   :  { %21 = dma.hbm_to_vmem [thread:$0]  %s155_s1, 1024, %s19_s10, [#allocation4]  }
   0xc   :  { %124 = dma.done.wait [#allocation4], 1024  }
   0xd   :  { %125 = vsyncadd [#allocation4], 4294966272  ;;  %v34_v0 = vstv %s154_s0  ;;  %v25_v1 = vld [vmem:[#allocation3] sm:$0xff]  ;;  %v26_v2 = vld [vmem:[#allocation3 + $0x8] sm:$0xff]  ;;  %s129_s0 = smov [#allocation6]  }
   0xe   :  { %v27_v3 = vld [vmem:[#allocation3 + $0x10] sm:$0xff]  ;;  %v35_v4 = vsub.f32 %v25_v1, %v34_v0  ;;  %v36_v5 = vsub.f32 %v26_v2, %v34_v0  ;;  %v28_v7 = vld [vmem:[#allocation3 + $0x18] sm:$0xff]  ;;  %v29_v8 = vld [vmem:[#allocation3 + $0x20] sm:$0xff]  ;;  %s73_s1 = sshll.u32 %s129_s0, 4  ;;  %s74_s1 = int_to_ptr.vmem [resolvable:$true] %s73_s1 }
   0xf   :  { %v37_v6 = vsub.f32 %v27_v3, %v34_v0  ;;  %v30_v9 = vld [vmem:[#allocation3 + $0x28] sm:$0xff]  ;;  %v38_v10 = vsub.f32 %v28_v7, %v34_v0  ;;  %v39_v11 = vsub.f32 %v29_v8, %v34_v0  ;;  %v31_v13 = vld [vmem:[#allocation3 + $0x30] sm:$0xff]  ;;  %v32_v14 = vld [vmem:[#allocation3 + $0x38] sm:$0xff]  ;;  %s104_s16 = scalar_lea.vmem %s74_s1, 1024  ;;  %p109_p6 = scmp.lt.s32.totalorder %s74_s1, %s74_s1 }
  0x10   :  { %v40_v12 = vsub.f32 %v30_v9, %v34_v0  ;;  %v43_v15 = vmax.f32 %v35_v4, 0.0  ;;  %v44_v16 = vmax.f32 %v36_v5, 0.0  ;;  %v41_v18 = vsub.f32 %v31_v13, %v34_v0  ;;  %p105_p5 = scmp.ne.s32.totalorder %s74_s1, %s104_s16  ;;  %p110_p7 = scmp.lt.s32.totalorder %s104_s16, %s104_s16 }
  0x11   :  { %v45_v17 = vmax.f32 %v37_v6, 0.0  ;;  %v46_v19 = vmax.f32 %v38_v10, 0.0  ;;  %v47_v20 = vmax.f32 %v39_v11, 0.0  ;;  %v42_v22 = vsub.f32 %v32_v14, %v34_v0 }
  0x12   :  { %v48_v21 = vmax.f32 %v40_v12, 0.0  ;;  %v51_v23 = vadd.f32 %v43_v15, %v34_v0  ;;  %v52_v24 = vadd.f32 %v44_v16, %v34_v0  ;;  %v49_v26 = vmax.f32 %v41_v18, 0.0  ;;  %p111_p8 = por %p110_p7, %p109_p6 }
  0x13   :  { %v53_v25 = vadd.f32 %v45_v17, %v34_v0  ;;  %v54_v27 = vadd.f32 %v46_v19, %v34_v0  ;;  %v55_v28 = vadd.f32 %v47_v20, %v34_v0  ;;  %v50_v30 = vmax.f32 %v42_v22, 0.0 }
  0x14   :  { %v56_v29 = vadd.f32 %v48_v21, %v34_v0  ;;  %59 = vst [vmem:[#allocation6] sm:$0xff] %v51_v23  ;;  %60 = vst [vmem:[#allocation6 + $0x8] sm:$0xff] %v52_v24  ;;  %v57_v31 = vadd.f32 %v49_v26, %v34_v0  ;;  %p112_p9 = pnand %p111_p8, %p105_p5 }
  0x15   :  { %61 = vst [vmem:[#allocation6 + $0x10] sm:$0xff] %v53_v25  ;;  %62 = vst [vmem:[#allocation6 + $0x18] sm:$0xff] %v54_v27  ;;  %v58_v32 = vadd.f32 %v50_v30, %v34_v0 }
  0x16   :  { %63 = vst [vmem:[#allocation6 + $0x20] sm:$0xff] %v55_v28  ;;  %64 = vst [vmem:[#allocation6 + $0x28] sm:$0xff] %v56_v29 }
  0x17   :  { %65 = vst [vmem:[#allocation6 + $0x30] sm:$0xff] %v57_v31  ;;  %66 = vst [vmem:[#allocation6 + $0x38] sm:$0xff] %v58_v32 }
  0x18   :  { %115 = shalt.err (!%p112_p9)
}
  0x19   :  { %76 = dma.vmem_to_hbm [thread:$0]  %s74_s1, 1024, %s156_s2, [#allocation5]  }
  0x1a   :  { %126 = dma.done.wait [#allocation5], 1024  }
  0x1b   :  { %127 = vsyncadd [#allocation5], 4294966272 }
  0x1c   :  { %80 = vsyncpa [#allocation4], 1 }
  0x1d   :  { %81 = vsyncpa [#allocation5], 1 }

</bundles_post_ra>
